<compile_context>
chip_gen: v7x
topology: tpu7x:2x2x1
jax: 0.10.0
libtpu: 0.0.40
codegen_flags: <defaults>
</compile_context>

<pallas_src>
import functools

import jax
import jax.numpy as jnp
from jax.experimental import pallas as pl
from jax.experimental.pallas import tpu as pltpu


def _round_up(n, m):
    return ((n + m - 1) // m) * m


def _mlp_forward_kernel(x_ref, blob_ref, out_ref, *, P):
    """out = Linear3(ReLU(Linear2(ReLU(Linear1([state, action]))))) + state.

    x_ref:    (TB, P)       padded activations, [state | action | 0-pad] in lanes.
    blob_ref: (3*P + 8, P)  packed params: W1 | W2 | W3 | bias rows (b1, b2, b3).
    out_ref:  (TB, P)       lane-dense output; valid result in lanes [0:S].
    """
    x = x_ref[...]

    w1 = blob_ref[0:P, :]
    w2 = blob_ref[P:2 * P, :]
    w3 = blob_ref[2 * P:3 * P, :]
    bias_blk = blob_ref[3 * P:3 * P + 8, :]
    b1 = bias_blk[0:1, :]
    b2 = bias_blk[1:2, :]
    b3 = bias_blk[2:3, :]

    # Layer 1 (+ ReLU) — concat already folded into one matmul via packed x.
    h1 = jnp.dot(x, w1, preferred_element_type=jnp.float32) + b1
    h1 = jnp.maximum(h1, 0.0)

    # Layer 2 (+ ReLU)
    h2 = jnp.dot(h1, w2, preferred_element_type=jnp.float32) + b2
    h2 = jnp.maximum(h2, 0.0)

    # Layer 3 + residual.  x holds `state` in lanes [0:S]; lanes beyond S of y
    # are sliced away by the wrapper, so adding x there is harmless.
    y = jnp.dot(h2, w3, preferred_element_type=jnp.float32) + b3
    out_ref[...] = (y + x).astype(out_ref.dtype)


def pack_params(params, P):
    """Pack w1/w2/w3/b1/b2/b3 into one (3*P + 8, P) lane-dense f32 blob."""
    w1, w2, w3 = params["w1"], params["w2"], params["w3"]
    H = w1.shape[1]
    S = w3.shape[1]

    def pad2(a):
        return jnp.pad(a, ((0, P - a.shape[0]), (0, P - a.shape[1])))

    bias = jnp.zeros((8, P), jnp.float32)
    bias = bias.at[0, :H].set(params["b1"].reshape(-1))
    bias = bias.at[1, :H].set(params["b2"].reshape(-1))
    bias = bias.at[2, :S].set(params["b3"].reshape(-1))

    return jnp.concatenate([pad2(w1), pad2(w2), pad2(w3), bias], axis=0)


def model_forward(state, action, blob, *, block_b=8):
    """state: (B, S), action: (B, A), blob: packed params -> (B, S) f32."""
    B, S = state.shape
    A = action.shape[1]
    P = blob.shape[1]

    # Pre-concatenate + lane-pad the activations (layer-1 concat fold).
    x = jnp.concatenate([state.astype(jnp.float32),
                         action.astype(jnp.float32)], axis=1)
    Bp = _round_up(B, block_b)
    x_pad = jnp.zeros((Bp, P), jnp.float32).at[:B, :S + A].set(x)

    kernel = functools.partial(_mlp_forward_kernel, P=P)

    out_pad = pl.pallas_call(
        kernel,
        out_shape=jax.ShapeDtypeStruct((Bp, P), jnp.float32),
        grid=(Bp // block_b,),
        in_specs=[
            # Batch tile of activations.
            pl.BlockSpec((block_b, P), lambda i: (i, 0)),
            # Packed parameter blob: constant block index -> resident in VMEM.
            pl.BlockSpec(blob.shape, lambda i: (0, 0)),
        ],
        out_specs=pl.BlockSpec((block_b, P), lambda i: (i, 0)),
        compiler_params=pltpu.CompilerParams(
            dimension_semantics=("parallel",)),
    )(x_pad, blob)

    return out_pad[:B, :S]


def _xavier_uniform(key, fan_in, fan_out, shape):
    # Matches torch.nn.init.xavier_uniform_ (gain=1).
    limit = jnp.sqrt(6.0 / (fan_in + fan_out))
    return jax.random.uniform(key, shape, jnp.float32, -limit, limit)


def init_params(key, state_dim, action_dim, hidden):
    """Deterministic synthetic parameters (same shapes as the PyTorch module).

    Weights are stored as (in_features, out_features) == PyTorch W.T so the
    kernel computes x @ W + b.
    """
    k1, k2, k3, k4, k5, k6 = jax.random.split(key, 6)
    in1 = state_dim + action_dim
    w1 = _xavier_uniform(k1, in1, hidden, (in1, hidden))
    w2 = _xavier_uniform(k2, hidden, hidden, (hidden, hidden))
    w3 = _xavier_uniform(k3, hidden, state_dim, (hidden, state_dim))
    # PyTorch Linear default bias init: U(-1/sqrt(fan_in), 1/sqrt(fan_in))
    b1 = jax.random.uniform(k4, (hidden,), jnp.float32,
                            -1.0 / jnp.sqrt(in1), 1.0 / jnp.sqrt(in1))
    b2 = jax.random.uniform(k5, (hidden,), jnp.float32,
                            -1.0 / jnp.sqrt(hidden), 1.0 / jnp.sqrt(hidden))
    b3 = jax.random.uniform(k6, (state_dim,), jnp.float32,
                            -1.0 / jnp.sqrt(hidden), 1.0 / jnp.sqrt(hidden))
    return {"w1": w1, "b1": b1, "w2": w2, "b2": b2, "w3": w3, "b3": b3}


def reference_forward(state, action, params):
    x = jnp.concatenate([state, action], axis=1)
    h1 = jnp.maximum(x @ params["w1"] + params["b1"], 0.0)
    h2 = jnp.maximum(h1 @ params["w2"] + params["b2"], 0.0)
    return h2 @ params["w3"] + params["b3"] + state


if __name__ == "__main__":
    key = jax.random.PRNGKey(0)
    k_params, k_state, k_action = jax.random.split(key, 3)

    # Small shapes consistent with Model(input_shape=(16,), outputs_count=8,
    # hidden_count=32).
    batch = 8
    state_dim = 16
    action_dim = 8
    hidden = 32

    params = init_params(k_params, state_dim, action_dim, hidden)
    state = jax.random.normal(k_state, (batch, state_dim), jnp.float32)
    action = jax.random.normal(k_action, (batch, action_dim), jnp.float32)

    # Padded lane width shared by all layers (multiple of 128).
    P = _round_up(max(state_dim + action_dim, hidden, state_dim), 128)
    blob = pack_params(params, P)

    out = model_forward(state, action, blob)
    out = jax.block_until_ready(out)

    ref = reference_forward(state, action, params)
    assert out.shape == (batch, state_dim)
    assert jnp.allclose(out, ref, atol=1e-4, rtol=1e-4), "mismatch vs reference"

    print("KERNEL_OK")
</pallas_src>

<mosaic_0001>
module attributes {stable_mosaic.version = 11 : i64} {
  func.func @_mlp_forward_kernel(%arg0: i32, %arg1: memref<8x128xf32, #tpu.memory_space<vmem>>, %arg2: memref<392x128xf32, #tpu.memory_space<vmem>>, %arg3: memref<8x128xf32, #tpu.memory_space<vmem>>) attributes {dimension_semantics = [#tpu.dimension_semantics<parallel>], iteration_bounds = array<i64: 1>, scalar_prefetch = 0 : i64, scratch_operands = 0 : i64, tpu.core_type = #tpu.core_type<tc>, window_params = [{transform_indices = @transform_0, window_bounds = array<i64: 8, 128>}, {pipeline_mode = #tpu.pipeline_mode<synchronous>, transform_indices = @transform_1, window_bounds = array<i64: 392, 128>}, {transform_indices = @transform_2, window_bounds = array<i64: 8, 128>}]} {
    %c0 = arith.constant 0 : index
    %c0_0 = arith.constant 0 : index
    %0 = vector.load %arg1[%c0, %c0_0] : memref<8x128xf32, #tpu.memory_space<vmem>>, vector<8x128xf32>
    %c0_1 = arith.constant 0 : index
    %c0_2 = arith.constant 0 : index
    %1 = vector.load %arg2[%c0_1, %c0_2] : memref<392x128xf32, #tpu.memory_space<vmem>>, vector<128x128xf32>
    %c128 = arith.constant 128 : index
    %c0_3 = arith.constant 0 : index
    %2 = vector.load %arg2[%c128, %c0_3] : memref<392x128xf32, #tpu.memory_space<vmem>>, vector<128x128xf32>
    %c256 = arith.constant 256 : index
    %c0_4 = arith.constant 0 : index
    %3 = vector.load %arg2[%c256, %c0_4] : memref<392x128xf32, #tpu.memory_space<vmem>>, vector<128x128xf32>
    %c384 = arith.constant 384 : index
    %c0_5 = arith.constant 0 : index
    %4 = vector.load %arg2[%c384, %c0_5] : memref<392x128xf32, #tpu.memory_space<vmem>>, vector<8x128xf32>
    %5 = vector.extract_strided_slice %4 {offsets = [0, 0], sizes = [1, 128], strides = [1, 1]} : vector<8x128xf32> to vector<1x128xf32>
    %6 = vector.extract_strided_slice %4 {offsets = [1, 0], sizes = [1, 128], strides = [1, 1]} : vector<8x128xf32> to vector<1x128xf32>
    %7 = vector.extract_strided_slice %4 {offsets = [2, 0], sizes = [1, 128], strides = [1, 1]} : vector<8x128xf32> to vector<1x128xf32>
    %cst = arith.constant dense<0.000000e+00> : vector<8x128xf32>
    %8 = tpu.matmul %0, %1, %cst {dimension_numbers = #tpu.dot_dimension_numbers<[1], [0], [0], [1], [0, 0, 1, 1], [], []>} : vector<8x128xf32>, vector<128x128xf32>, vector<8x128xf32> -> vector<8x128xf32>
    %9 = vector.broadcast %5 : vector<1x128xf32> to vector<8x128xf32>
    %10 = arith.addf %8, %9 : vector<8x128xf32>
    %cst_6 = arith.constant 0.000000e+00 : f32
    %11 = vector.broadcast %cst_6 : f32 to vector<8x128xf32>
    %12 = arith.maximumf %10, %11 : vector<8x128xf32>
    %cst_7 = arith.constant dense<0.000000e+00> : vector<8x128xf32>
    %13 = tpu.matmul %12, %2, %cst_7 {dimension_numbers = #tpu.dot_dimension_numbers<[1], [0], [0], [1], [0, 0, 1, 1], [], []>} : vector<8x128xf32>, vector<128x128xf32>, vector<8x128xf32> -> vector<8x128xf32>
    %14 = vector.broadcast %6 : vector<1x128xf32> to vector<8x128xf32>
    %15 = arith.addf %13, %14 : vector<8x128xf32>
    %cst_8 = arith.constant 0.000000e+00 : f32
    %16 = vector.broadcast %cst_8 : f32 to vector<8x128xf32>
    %17 = arith.maximumf %15, %16 : vector<8x128xf32>
    %cst_9 = arith.constant dense<0.000000e+00> : vector<8x128xf32>
    %18 = tpu.matmul %17, %3, %cst_9 {dimension_numbers = #tpu.dot_dimension_numbers<[1], [0], [0], [1], [0, 0, 1, 1], [], []>} : vector<8x128xf32>, vector<128x128xf32>, vector<8x128xf32> -> vector<8x128xf32>
    %19 = vector.broadcast %7 : vector<1x128xf32> to vector<8x128xf32>
    %20 = arith.addf %18, %19 : vector<8x128xf32>
    %21 = arith.addf %20, %0 : vector<8x128xf32>
    %c0_10 = arith.constant 0 : index
    %c0_11 = arith.constant 0 : index
    %22 = vector.load %arg3[%c0_10, %c0_11] : memref<8x128xf32, #tpu.memory_space<vmem>>, vector<8x128xf32>
    tpu.vector_store %arg3[%c0_10, %c0_11], %21 {strides = array<i32>} : memref<8x128xf32, #tpu.memory_space<vmem>>, vector<8x128xf32>,
    return
  }
  func.func @transform_0(%arg0: i32) -> (i32, i32) {
    %c0_i32 = arith.constant 0 : i32
    %c0_i32_0 = arith.constant 0 : i32
    return %arg0, %c0_i32 : i32, i32
  }
  func.func @transform_1(%arg0: i32) -> (i32, i32) {
    %c0_i32 = arith.constant 0 : i32
    %c0_i32_0 = arith.constant 0 : i32
    %c0_i32_1 = arith.constant 0 : i32
    return %c0_i32, %c0_i32_0 : i32, i32
  }
  func.func @transform_2(%arg0: i32) -> (i32, i32) {
    %c0_i32 = arith.constant 0 : i32
    %c0_i32_0 = arith.constant 0 : i32
    return %arg0, %c0_i32 : i32, i32
  }
}

</mosaic_0001>

<bundles_post_ra>
// kernel: tpu_custom_call.1
= control target key start
LH: loop header
LB: loop body
LE: loop exit
PB: predicated region body
PF: predicated region fallthrough
CT: control target
= control target key end

     0   :  { %7 = vsyncpa [#allocation3], 0  ;;  %s738_s0 = inlined_call_operand.hbm [shape: f32[8,128], index: 0, kind: input, shape index: {}]   ;;  %s739_s1 = inlined_call_operand.hbm [shape: f32[392,128], index: 1, kind: input, shape index: {}]   ;;  %s740_s2 = inlined_call_operand.hbm [shape: f32[8,128], index: 2, kind: output, shape index: {}]  }
   0x1   :  { %8 = vsyncpa [#allocation6], 0 }
   0x2   :  { %9 = vsyncpa [#allocation4], 0  ;;  %s638_s9 = smov [#allocation2]   ;;  %s639_s11 = smov [#allocation5]  }
   0x3   :  { %s16_s10 = sshll.u32 %s638_s9, 4  ;;  %s25_s12 = sshll.u32 %s639_s11, 4  ;;  %s17_s10 = int_to_ptr.vmem [resolvable:$true] %s16_s10  ;;  %s661_s12 = int_to_ptr.vmem [resolvable:$true] %s25_s12 }
   0x4   :  { %s566_s15 = scalar_lea.hbm %s738_s0, 128 }
   0x5   :  { %p567_p0 = scmp.ne.s32.totalorder %s738_s0, %s566_s15  ;;  %p570_p1 = scmp.lt.u32.totalorder %s566_s15, %s738_s0 }
   0x7   :  { %p572_p2 = pnand %p570_p1, %p567_p0 }
   0x9   :  { %575 = shalt.err (!%p572_p2)
}
   0xa   :  { %s576_s20 = scalar_lea.vmem %s17_s10, 128  ;;  %p581_p4 = scmp.lt.s32.totalorder %s17_s10, %s17_s10 }
   0xb   :  { %p577_p3 = scmp.ne.s32.totalorder %s17_s10, %s576_s20  ;;  %p582_p5 = scmp.lt.s32.totalorder %s576_s20, %s576_s20 }
   0xd   :  { %p583_p6 = por %p582_p5, %p581_p4 }
   0xf   :  { %p584_p7 = pnand %p583_p6, %p577_p3 }
  0x11   :  { %587 = shalt.err (!%p584_p7)
}
  0x12   :  { %19 = dma.hbm_to_vmem [thread:$0]  %s738_s0, 128, %s17_s10, [#allocation3]  }
  0x13   :  { %s588_s25 = scalar_lea.hbm %s739_s1, 6272 }
  0x14   :  { %p589_p8 = scmp.ne.s32.totalorder %s739_s1, %s588_s25  ;;  %p592_p9 = scmp.lt.u32.totalorder %s588_s25, %s739_s1 }
  0x16   :  { %p594_p10 = pnand %p592_p9, %p589_p8 }
  0x18   :  { %597 = shalt.err (!%p594_p10)
}
  0x19   :  { %s598_s30 = scalar_lea.vmem %s661_s12, 6272  ;;  %p603_p12 = scmp.lt.s32.totalorder %s661_s12, %s661_s12 }
  0x1a   :  { %p599_p11 = scmp.ne.s32.totalorder %s661_s12, %s598_s30  ;;  %p604_p13 = scmp.lt.s32.totalorder %s598_s30, %s598_s30 }
  0x1c   :  { %p605_p0 = por %p604_p13, %p603_p12 }
  0x1e   :  { %p606_p1 = pnand %p605_p0, %p599_p11 }
  0x20   :  { %609 = shalt.err (!%p606_p1)
}
  0x21   :  { %s640_s0 = smov 128   ;;  %s641_s3 = smov 8  }
  0x22   :  { %31 = dma.hbm_to_vmem [thread:$0]  %s739_s1, 6272, %s661_s12, [#allocation6], %s640_s0, %s640_s0, %s641_s3  }
  0x23   :  { %632 = dma.done.wait [#allocation3], 128  }
  0x24   :  { %633 = vsyncadd [#allocation3], 4294967168 }
  0x25   :  { %634 = dma.done.wait [#allocation6], 6272  }
  0x26   :  { %635 = vsyncadd [#allocation6], 4294961024  ;;  %v642_v0 = vmov 0.0|0.0   ;;  %vm643_vm0 = vmmov 0   ;;  %v644_v1 = vmov 0.0   ;;  %v39_v2 = vld [vmem:[#allocation5] sm:$0xff] }
  0x27   :  { %486 = vmatprep.subr.bf16.mxu0 %v642_v0  ;;  %413 = vmatprep.mubr.msk.f32.mxu0 %vm643_vm0, %v644_v1  ;;  %v40_v3 = vld [vmem:[#allocation5 + $0x8] sm:$0xff]  ;;  %v41_v4 = vld [vmem:[#allocation5 + $0x10] sm:$0xff]  ;;  %v42_v6 = vld [vmem:[#allocation5 + $0x18] sm:$0xff]  ;;  %s645_s1 = smov [#allocation7]  }
  0x28   :  { %510 = vmatprep.subr.bf16.mxu1 %v642_v0  ;;  %448 = vmatprep.mubr.msk.f32.mxu1 %vm643_vm0, %v644_v1  ;;  %v487_v5 = vpack.c.bf16 %v40_v3, %v39_v2  ;;  %v490_v7 = vpack.c.bf16 %v42_v6, %v41_v4  ;;  %v43_v8 = vld [vmem:[#allocation5 + $0x20] sm:$0xff]  ;;  %v44_v9 = vld [vmem:[#allocation5 + $0x28] sm:$0xff]  ;;  %v57_v12 = vld [vmem:[#allocation5 + $0x90] sm:$0xff]  ;;  %s320_s6 = sshll.u32 %s645_s1, 4  ;;  %s321_s6 = int_to_ptr.vmem [resolvable:$true] %s320_s6 }
  0x29   :  { %v55_v10 = vld [vmem:[#allocation5 + $0x80] sm:$0xff]  ;;  %v56_v11 = vld [vmem:[#allocation5 + $0x88] sm:$0xff]  ;;  %v58_v13 = vld [vmem:[#allocation5 + $0x98] sm:$0xff]  ;;  %v493_v14 = vpack.c.bf16 %v44_v9, %v43_v8  ;;  %v88_v9 = vlaneseq  ;;  %s610_s7 = scalar_lea.vmem %s321_s6, 128  ;;  %p615_p3 = scmp.lt.s32.totalorder %s321_s6, %s321_s6 }
  0x2a   :  { %488 = vmatpush3.bf16.msra.mxu0 %v487_v5  ;;  %v511_v15 = vpack.c.bf16 %v56_v11, %v55_v10  ;;  %v45_v16 = vld [vmem:[#allocation5 + $0x30] sm:$0xff]  ;;  %v46_v17 = vld [vmem:[#allocation5 + $0x38] sm:$0xff]  ;;  %v514_v18 = vpack.c.bf16 %v58_v13, %v57_v12  ;;  %v59_v19 = vld [vmem:[#allocation5 + $0xa0] sm:$0xff]  ;;  %p611_p2 = scmp.ne.s32.totalorder %s321_s6, %s610_s7  ;;  %p616_p4 = scmp.lt.s32.totalorder %s610_s7, %s610_s7 }
  0x2b   :  { %489 = vmatprep.subr.bf16.mxu0 %v642_v0  ;;  %v60_v20 = vld [vmem:[#allocation5 + $0xa8] sm:$0xff]  ;;  %v496_v21 = vpack.c.bf16 %v46_v17, %v45_v16  ;;  %v47_v22 = vld [vmem:[#allocation5 + $0x40] sm:$0xff]  ;;  %v61_v25 = vld [vmem:[#allocation5 + $0xb0] sm:$0xff]  ;;  %v89_v10 = vshrl.u32 %v88_v9, 7 }
  0x2c   :  { %512 = vmatpush3.bf16.msra.mxu1 %v511_v15  ;;  %v48_v23 = vld [vmem:[#allocation5 + $0x48] sm:$0xff]  ;;  %v517_v24 = vpack.c.bf16 %v60_v20, %v59_v19  ;;  %v62_v26 = vld [vmem:[#allocation5 + $0xb8] sm:$0xff]  ;;  %v49_v28 = vld [vmem:[#allocation5 + $0x50] sm:$0xff]  ;;  %p617_p5 = por %p616_p4, %p615_p3 }
  0x2d   :  { %513 = vmatprep.subr.bf16.mxu1 %v642_v0  ;;  %v499_v27 = vpack.c.bf16 %v48_v23, %v47_v22  ;;  %v50_v29 = vld [vmem:[#allocation5 + $0x58] sm:$0xff]  ;;  %v520_v30 = vpack.c.bf16 %v62_v26, %v61_v25  ;;  %v63_v31 = vld [vmem:[#allocation5 + $0xc0] sm:$0xff]  ;;  %v64_v32 = vld [vmem:[#allocation5 + $0xc8] sm:$0xff]  ;;  %v90_v11 = vsub.s32 0, %v89_v10  ;;  %v240_v26 = vsub.s32 2, %v89_v10 }
  0x2e   :  { %491 = vmatpush3.bf16.msra.mxu0 %v490_v7  ;;  %v502_v33 = vpack.c.bf16 %v50_v29, %v49_v28  ;;  %v51_v34 = vld [vmem:[#allocation5 + $0x60] sm:$0xff]  ;;  %v52_v35 = vld [vmem:[#allocation5 + $0x68] sm:$0xff]  ;;  %v523_v36 = vpack.c.bf16 %v64_v32, %v63_v31  ;;  %v65_v37 = vld [vmem:[#allocation5 + $0xd0] sm:$0xff]  ;;  %p618_p6 = pnand %p617_p5, %p611_p2 }
  0x2f   :  { %492 = vmatprep.subr.bf16.mxu0 %v642_v0  ;;  %v66_v38 = vld [vmem:[#allocation5 + $0xd8] sm:$0xff]  ;;  %v505_v39 = vpack.c.bf16 %v52_v35, %v51_v34  ;;  %v53_v40 = vld [vmem:[#allocation5 + $0x70] sm:$0xff]  ;;  %v67_v43 = vld [vmem:[#allocation5 + $0xe0] sm:$0xff] }
  0x30   :  { %515 = vmatpush3.bf16.msra.mxu1 %v514_v18  ;;  %v54_v41 = vld [vmem:[#allocation5 + $0x78] sm:$0xff]  ;;  %v526_v42 = vpack.c.bf16 %v66_v38, %v65_v37  ;;  %v68_v44 = vld [vmem:[#allocation5 + $0xe8] sm:$0xff]  ;;  %v69_v48 = vld [vmem:[#allocation5 + $0xf0] sm:$0xff] }
  0x31   :  { %516 = vmatprep.subr.bf16.mxu1 %v642_v0  ;;  %v508_v45 = vpack.c.bf16 %v54_v41, %v53_v40  ;;  %v529_v46 = vpack.c.bf16 %v68_v44, %v67_v43  ;;  %v711_v47 = vld [vmem:[#allocation2] sm:$0xff]  ;;  %v71_v51 = vld [vmem:[#allocation5 + $0x100] sm:$0xff]  ;;  %v72_v52 = vld [vmem:[#allocation5 + $0x108] sm:$0xff] }
  0x32   :  { %494 = vmatpush3.bf16.msra.mxu0 %v493_v14  ;;  %v70_v49 = vld [vmem:[#allocation5 + $0xf8] sm:$0xff]  ;;  %v73_v53 = vld [vmem:[#allocation5 + $0x110] sm:$0xff]  ;;  %v535_v54 = vpack.c.bf16 %v72_v52, %v71_v51  ;;  %v75_v57 = vld [vmem:[#allocation5 + $0x120] sm:$0xff] }
  0x33   :  { %495 = vmatprep.subr.bf16.mxu0 %v642_v0  ;;  %v532_v50 = vpack.c.bf16 %v70_v49, %v69_v48  ;;  %v74_v55 = vld [vmem:[#allocation5 + $0x118] sm:$0xff]  ;;  %v76_v58 = vld [vmem:[#allocation5 + $0x128] sm:$0xff]  ;;  %v77_v60 = vld [vmem:[#allocation5 + $0x130] sm:$0xff] }
  0x34   :  { %518 = vmatpush3.bf16.msra.mxu1 %v517_v24  ;;  %v538_v56 = vpack.c.bf16 %v74_v55, %v73_v53  ;;  %v541_v59 = vpack.c.bf16 %v76_v58, %v75_v57  ;;  %v78_v61 = vld [vmem:[#allocation5 + $0x138] sm:$0xff]  ;;  %v79_v63 = vld [vmem:[#allocation5 + $0x140] sm:$0xff]  ;;  %v81_v3 = vld [vmem:[#allocation5 + $0x150] sm:$0xff] }
  0x35   :  { %519 = vmatprep.subr.bf16.mxu1 %v642_v0  ;;  %v544_v62 = vpack.c.bf16 %v78_v61, %v77_v60  ;;  %v82_v4 = vld [vmem:[#allocation5 + $0x158] sm:$0xff]  ;;  %v83_v6 = vld [vmem:[#allocation5 + $0x160] sm:$0xff]  ;;  %v84_v7 = vld [vmem:[#allocation5 + $0x168] sm:$0xff] }
  0x36   :  { %497 = vmatpush3.bf16.msra.mxu0 %v496_v21  ;;  %v550_v5 = vpack.c.bf16 %v82_v4, %v81_v3  ;;  %v553_v8 = vpack.c.bf16 %v84_v7, %v83_v6  ;;  %v87_v12 = vld [vmem:[#allocation5 + $0x180] sm:$0xff]  ;;  %v85_v18 = vld [vmem:[#allocation5 + $0x170] sm:$0xff]  ;;  %v86_v19 = vld [vmem:[#allocation5 + $0x178] sm:$0xff]  ;;  %v165_v21 = vsub.s32 1, %v89_v10 }
  0x37   :  { %498 = vmatprep.subr.bf16.mxu0 %v642_v0  ;;  %v91_v13 = vrot.slane %v87_v12, %v90_v11  ;;  %v556_v20 = vpack.c.bf16 %v86_v19, %v85_v18 }
  0x38   :  { %521 = vmatpush3.bf16.msra.mxu1 %v520_v30  ;;  %v166_v22 = vrot.slane %v87_v12, %v165_v21 }
  0x39   :  { %522 = vmatprep.subr.bf16.mxu1 %v642_v0 }
  0x3a   :  { %500 = vmatpush3.bf16.msra.mxu0 %v499_v27  ;;  %v241_v27 = vrot.slane %v87_v12, %v240_v26 }
  0x3b   :  { %501 = vmatprep.subr.bf16.mxu0 %v642_v0 }
  0x3c   :  { %524 = vmatpush3.bf16.msra.mxu1 %v523_v36 }
  0x3d   :  { %525 = vmatprep.subr.bf16.mxu1 %v642_v0 }
  0x3e   :  { %503 = vmatpush3.bf16.msra.mxu0 %v502_v33 }
  0x3f   :  { %504 = vmatprep.subr.bf16.mxu0 %v642_v0 }
  0x40   :  { %527 = vmatpush3.bf16.msra.mxu1 %v526_v42 }
  0x41   :  { %528 = vmatprep.subr.bf16.mxu1 %v642_v0 }
  0x42   :  { %506 = vmatpush3.bf16.msra.mxu0 %v505_v39 }
  0x43   :  { %507 = vmatprep.subr.bf16.mxu0 %v642_v0 }
  0x44   :  { %530 = vmatpush3.bf16.msra.mxu1 %v529_v46 }
  0x45   :  { %531 = vmatprep.subr.bf16.mxu1 %v642_v0 }
  0x46   :  { %509 = vmatpush3.bf16.msra.mxu0 %v508_v45 }
  0x47   :  { %534 = vmatprep.subr.bf16.mxu0 %v642_v0 }
  0x48   :  { %533 = vmatpush3.bf16.msra.mxu1 %v532_v50 }
  0x49   :  { %414 = vmatmul.mubr.f32.vlgmr.msra.gmra.mrb[0].mxu0 %v711_v47 }
  0x4a   :  { %483 = vmatprep.mubr.msk.f32.mxu0 %vm643_vm0, %v644_v1  ;;  %536 = vmatpush3.bf16.msra.mxu0 %v535_v54  ;;  %v80_v1 = vld [vmem:[#allocation5 + $0x148] sm:$0xff] }
  0x4b   :  { %537 = vmatprep.subr.bf16.mxu0 %v642_v0  ;;  %v547_v2 = vpack.c.bf16 %v80_v1, %v79_v63 }
  0x4e   :  { %539 = vmatpush3.bf16.msra.mxu0 %v538_v56 }
  0x4f   :  { %540 = vmatprep.subr.bf16.mxu0 %v642_v0 }
  0x52   :  { %542 = vmatpush3.bf16.msra.mxu0 %v541_v59 }
  0x53   :  { %543 = vmatprep.subr.bf16.mxu0 %v642_v0 }
  0x56   :  { %545 = vmatpush3.bf16.msra.mxu0 %v544_v62 }
  0x57   :  { %546 = vmatprep.subr.bf16.mxu0 %v642_v0 }
  0x5a   :  { %548 = vmatpush3.bf16.msra.mxu0 %v547_v2 }
  0x5b   :  { %549 = vmatprep.subr.bf16.mxu0 %v642_v0 }
  0x5e   :  { %551 = vmatpush3.bf16.msra.mxu0 %v550_v5 }
  0x5f   :  { %552 = vmatprep.subr.bf16.mxu0 %v642_v0 }
  0x62   :  { %554 = vmatpush3.bf16.msra.mxu0 %v553_v8 }
  0x63   :  { %555 = vmatprep.subr.bf16.mxu0 %v642_v0 }
  0x66   :  { %557 = vmatpush3.bf16.msra.mxu0 %v556_v20 }
 0x11c   :  { %v158_v14 = vpop.f32.mrb[0].mxu0 }
 0x11d   :  { %v159_v15 = vadd.f32 %v158_v14, %v91_v13  ;;  %v415_v16 = vpop.f32.mrb[1].mxu0 }
 0x11f   :  { %v162_v17 = vmax.f32 %v159_v15, 0.0 }
 0x121   :  { %449 = vmatmul.mubr.f32.vlgmr.msra.gmra.mrb[0].mxu1 %v162_v17 }
 0x1f4   :  { %v233_v23 = vpop.f32.mrb[0].mxu1 }
 0x1f5   :  { %v234_v24 = vadd.f32 %v233_v23, %v166_v22  ;;  %v450_v25 = vpop.f32.mrb[1].mxu1 }
 0x1f7   :  { %v237_v0 = vmax.f32 %v234_v24, 0.0 }
 0x1f9   :  { %484 = vmatmul.mubr.f32.vlgmr.msra.gmra.mrb[2].mxu0 %v237_v0 }
 0x2cc   :  { %v308_v28 = vpop.f32.mrb[2].mxu0 }
 0x2cd   :  { %v309_v29 = vadd.f32 %v308_v28, %v241_v27  ;;  %v485_v30 = vpop.f32.mrb[3].mxu0 }
 0x2cf   :  { %v312_v31 = vadd.f32 %v309_v29, %v711_v47 }
 0x2d1   :  { %313 = vst [vmem:[#allocation7] sm:$0xff] %v312_v31 }
 0x2d2   :  { %621 = shalt.err (!%p618_p6)
}
 0x2d3   :  { %s622_s10 = scalar_lea.hbm %s740_s2, 128 }
 0x2d4   :  { %p623_p7 = scmp.ne.s32.totalorder %s740_s2, %s622_s10  ;;  %p626_p8 = scmp.lt.u32.totalorder %s622_s10, %s740_s2 }
 0x2d6   :  { %p628_p9 = pnand %p626_p8, %p623_p7 }
 0x2d8   :  { %631 = shalt.err (!%p628_p9)
}
 0x2d9   :  { %323 = dma.vmem_to_hbm [thread:$0]  %s321_s6, 128, %s740_s2, [#allocation4]  }
 0x2da   :  { %636 = dma.done.wait [#allocation4], 128  }
 0x2db   :  { %637 = vsyncadd [#allocation4], 4294967168 }
 0x2dc   :  { %327 = vsyncpa [#allocation3], 1 }
 0x2dd   :  { %328 = vsyncpa [#allocation6], 1 }
 0x2de   :  { %329 = vsyncpa [#allocation4], 1 }

</bundles_post_ra>
